<compile_context>
chip_gen: v6e
topology: v6e:2x2x1
jax: 0.10.0
libtpu: 0.0.40
codegen_flags: <defaults>
</compile_context>

<pallas_src>
import jax
import jax.numpy as jnp
import numpy as np
from jax.experimental import pallas as pl
from jax.experimental.pallas import tpu as pltpu

EPS = 1e-4     # Glow-TTS LayerNorm epsilon
LANE = 128     # lane offset of the interior region inside the conv pad scratches


def duration_predictor_kernel(x_ref, m_ref,
                              w1_ref, b1_ref, g1_ref, be1_ref,
                              w2_ref, b2_ref, g2_ref, be2_ref,
                              wp_ref, bp_ref,
                              o_ref,
                              pad1_ref, pad2_ref):
    C, T = x_ref.shape                 # per-batch [C_pad, T] tile (batch dim squeezed)
    K, H, _ = w2_ref.shape             # conv_2 weight is [K, H, H]
    P = K // 2

    mask = m_ref[...]                  # [1, T] f32 (0/1), broadcasts over sublanes
    mask_b16 = mask.astype(jnp.bfloat16)

    # Zero only the K-1 halo columns of each pad scratch; the interior [LANE, LANE+T)
    # is fully overwritten below.  Done every step (not under pl.when(first step)):
    # scratch is per-TensorCore and the batch axis is "parallel", so a second core
    # would otherwise never run the init.  Cost: four single-column masked stores.
    pad1_ref[:, pl.ds(LANE - P, P)] = jnp.zeros((C, P), jnp.bfloat16)
    pad1_ref[:, pl.ds(LANE + T, P)] = jnp.zeros((C, P), jnp.bfloat16)
    pad2_ref[:, pl.ds(LANE - P, P)] = jnp.zeros((H, P), jnp.bfloat16)
    pad2_ref[:, pl.ds(LANE + T, P)] = jnp.zeros((H, P), jnp.bfloat16)

    def conv_relu_ln(pad_ref, w_ref, b_ref, g_ref, be_ref):
        # K accumulating tap matmuls: bf16 operands, f32 accumulation.  Same total MXU
        # contraction as the fused im2col matmul, but no [K*C, T] concatenate copy.
        acc = jnp.dot(w_ref[0], pad_ref[:, pl.ds(LANE - P, T)],
                      preferred_element_type=jnp.float32)
        for j in range(1, K):
            acc += jnp.dot(w_ref[j], pad_ref[:, pl.ds(LANE - P + j, T)],
                           preferred_element_type=jnp.float32)
        h = jnp.maximum(acc + b_ref[...], 0.0)
        # Glow-TTS LayerNorm over the channel (sublane) axis.  Single-pass variance
        # (two independent cross-sublane reductions), clamped at 0 to guard against
        # cancellation when |mean| >> std.
        inv_n = 1.0 / h.shape[0]
        mean = jnp.sum(h, axis=0, keepdims=True) * inv_n          # [1, T]
        mean_sq = jnp.sum(h * h, axis=0, keepdims=True) * inv_n   # [1, T]
        var = jnp.maximum(mean_sq - mean * mean, 0.0)
        return (h - mean) * jax.lax.rsqrt(var + EPS) * g_ref[...] + be_ref[...]

    # ---- conv_1(x * mask) -> relu -> layer_norm (dropout = identity) ----
    pad1_ref[:, pl.ds(LANE, T)] = x_ref[...] * mask_b16           # lane-aligned store
    h = conv_relu_ln(pad1_ref, w1_ref, b1_ref, g1_ref, be1_ref)   # f32 [H, T]

    # ---- conv_2(h * mask) -> relu -> layer_norm (dropout = identity) ----
    pad2_ref[:, pl.ds(LANE, T)] = (h * mask).astype(jnp.bfloat16)
    h = conv_relu_ln(pad2_ref, w2_ref, b2_ref, g2_ref, be2_ref)

    # ---- proj: 1x1 conv hidden -> 1, as broadcast-multiply + sublane reduce ----
    hm = h * mask
    out = jnp.sum(hm * wp_ref[...], axis=0, keepdims=True) + bp_ref[...]   # [1, T]
    o_ref[...] = out * mask


def duration_predictor(x_bct, x_mask_b1t, params):
    """x: [B, C, T], x_mask: [B, 1, T] (PyTorch layout). Returns [B, 1, T] f32."""
    B, C, T = x_bct.shape
    K, H, C_pad = params["w1"].shape
    assert params["w2"].shape == (K, H, H)
    assert K % 2 == 1, "padding=k//2 only reproduces 'same' conv for odd kernel sizes"
    assert K // 2 <= LANE
    assert H % 8 == 0, "hidden channels must be sublane-aligned"
    assert C_pad % 8 == 0 and C_pad >= C
    P = K // 2

    # bf16 activations into the MXU (review item 1); mask stays f32 (exact 0/1).
    x = x_bct.astype(jnp.bfloat16)
    if C_pad != C:  # sublane-align the input channel dim (matching weight cols are zero)
        x = jnp.pad(x, ((0, 0), (0, C_pad - C), (0, 0)))
    mask = x_mask_b1t.astype(jnp.float32)

    const2d = lambda b: (0, 0)
    const3d = lambda b: (0, 0, 0)
    grid_spec = pltpu.PrefetchScalarGridSpec(
        num_scalar_prefetch=0,
        grid=(B,),                                               # one batch per grid step
        in_specs=[
            pl.BlockSpec((None, C_pad, T), lambda b: (b, 0, 0)),   # x (bf16)
            pl.BlockSpec((None, 1, T), lambda b: (b, 0, 0)),       # mask row (f32)
            pl.BlockSpec((K, H, C_pad), const3d),                  # w1 taps (bf16)
            pl.BlockSpec((H, 1), const2d),                         # b1
            pl.BlockSpec((H, 1), const2d),                         # gamma1
            pl.BlockSpec((H, 1), const2d),                         # beta1
            pl.BlockSpec((K, H, H), const3d),                      # w2 taps (bf16)
            pl.BlockSpec((H, 1), const2d),                         # b2
            pl.BlockSpec((H, 1), const2d),                         # gamma2
            pl.BlockSpec((H, 1), const2d),                         # beta2
            pl.BlockSpec((H, 1), const2d),                         # proj weight column
            pl.BlockSpec((1, 1), const2d),                         # proj bias
        ],
        out_specs=pl.BlockSpec((None, 1, T), lambda b: (b, 0, 0)),
        scratch_shapes=[
            pltpu.VMEM((C_pad, LANE + T + P), jnp.bfloat16),   # zero-padded conv_1 input
            pltpu.VMEM((H, LANE + T + P), jnp.bfloat16),       # zero-padded conv_2 input
        ],
    )

    return pl.pallas_call(
        duration_predictor_kernel,
        out_shape=jax.ShapeDtypeStruct((B, 1, T), jnp.float32),
        grid_spec=grid_spec,
        compiler_params=pltpu.CompilerParams(
            dimension_semantics=("parallel",),        # 2 TCs on v7x; no-op on v5e/v6e
            vmem_limit_bytes=32 * 1024 * 1024,        # v5e scoped default is only 16 MiB
        ),
    )(x, mask,
      params["w1"], params["b1"], params["g1"], params["be1"],
      params["w2"], params["b2"], params["g2"], params["be2"],
      params["wp"], params["bp"])


def make_kernel_params(tp, C, C_pad):
    """Convert PyTorch-layout params to the kernel's layouts (conv weights bf16)."""
    H, _, K = tp["w1"].shape                       # Conv1d weight [out, in, k]
    w1 = tp["w1"]
    if C_pad != C:
        w1 = jnp.pad(w1, ((0, 0), (0, C_pad - C), (0, 0)))
    w1 = jnp.transpose(w1, (2, 0, 1)).astype(jnp.bfloat16)        # [K, H, C_pad]
    w2 = jnp.transpose(tp["w2"], (2, 0, 1)).astype(jnp.bfloat16)  # [K, H, H]
    col = lambda v: v.reshape(-1, 1).astype(jnp.float32)
    return dict(
        w1=w1, b1=col(tp["b1"]), g1=col(tp["g1"]), be1=col(tp["be1"]),
        w2=w2, b2=col(tp["b2"]), g2=col(tp["g2"]), be2=col(tp["be2"]),
        wp=tp["wp"][0].astype(jnp.float32),        # [H, 1] (proj is a f32 VPU reduce)
        bp=tp["bp"].reshape(1, 1).astype(jnp.float32),
    )


# ---------------- pure-JAX f32 reference (PyTorch [B, C, T] layout) ----------------
def reference_jax(x_bct, mask_b1t, tp):
    def conv1d(x, w_oik, bias_o):
        K = w_oik.shape[2]
        Tn = x.shape[2]
        xp = jnp.pad(x, ((0, 0), (0, 0), (K // 2, K // 2)))
        out = sum(jnp.einsum("bct,oc->bot", xp[:, :, j:j + Tn], w_oik[:, :, j])
                  for j in range(K))
        return out + bias_o.reshape(1, -1, 1)

    def ln(x, g, b):
        mean = jnp.mean(x, axis=1, keepdims=True)
        var = jnp.mean((x - mean) ** 2, axis=1, keepdims=True)
        return ((x - mean) * jax.lax.rsqrt(var + EPS)
                * g.reshape(1, -1, 1) + b.reshape(1, -1, 1))

    m = mask_b1t
    h = conv1d(x_bct * m, tp["w1"], tp["b1"])
    h = jax.nn.relu(h)
    h = ln(h, tp["g1"], tp["be1"])
    h = conv1d(h * m, tp["w2"], tp["b2"])
    h = jax.nn.relu(h)
    h = ln(h, tp["g2"], tp["be2"])
    out = jnp.einsum("bct,oc->bot", h * m, tp["wp"][:, :, 0]) + tp["bp"].reshape(1, -1, 1)
    return out * m


if __name__ == "__main__":
    B, C_IN, HID, K, T = 2, 4, 32, 3, 16

    key = jax.random.PRNGKey(0)
    ks = jax.random.split(key, 8)
    scale = 0.1
    torch_params = dict(
        w1=scale * jax.random.normal(ks[0], (HID, C_IN, K), jnp.float32),  # Conv1d [out,in,k]
        b1=scale * jax.random.normal(ks[1], (HID,), jnp.float32),
        g1=jnp.full((HID,), 0.1, jnp.float32),      # Glow-TTS LayerNorm gamma init
        be1=jnp.zeros((HID,), jnp.float32),
        w2=scale * jax.random.normal(ks[2], (HID, HID, K), jnp.float32),
        b2=scale * jax.random.normal(ks[3], (HID,), jnp.float32),
        g2=jnp.full((HID,), 0.1, jnp.float32),
        be2=jnp.zeros((HID,), jnp.float32),
        wp=scale * jax.random.normal(ks[4], (1, HID, 1), jnp.float32),     # proj [1, H, 1]
        bp=scale * jax.random.normal(ks[5], (1,), jnp.float32),
    )

    C_pad = ((C_IN + 7) // 8) * 8
    params = make_kernel_params(torch_params, C_IN, C_pad)

    x = jax.random.normal(ks[6], (B, C_IN, T), jnp.float32)               # [B, C, T]
    lengths = jnp.array([T, T - 5], dtype=jnp.int32)
    t_idx = jnp.arange(T)[None, :]
    x_mask = (t_idx < lengths[:, None]).astype(jnp.float32)[:, None, :]   # [B, 1, T]

    out = duration_predictor(x, x_mask, params)
    out = jax.block_until_ready(out)

    ref = reference_jax(x, x_mask, torch_params)
    assert out.shape == (B, 1, T)
    # Kernel runs its conv contractions with bf16 operands (f32 accumulation) per the
    # performance review; the reference is pure f32, hence the bf16-level tolerance.
    np.testing.assert_allclose(np.asarray(out), np.asarray(ref), rtol=3e-2, atol=1e-2)
    print("KERNEL_OK")
</pallas_src>

<mosaic_0001>
module attributes {stable_mosaic.version = 11 : i64} {
  func.func @duration_predictor_kernel(%arg0: i32, %arg1: memref<1x8x16xbf16, #tpu.memory_space<vmem>>, %arg2: memref<1x1x16xf32, #tpu.memory_space<vmem>>, %arg3: memref<3x32x8xbf16, #tpu.memory_space<vmem>>, %arg4: memref<32x1xf32, #tpu.memory_space<vmem>>, %arg5: memref<32x1xf32, #tpu.memory_space<vmem>>, %arg6: memref<32x1xf32, #tpu.memory_space<vmem>>, %arg7: memref<3x32x32xbf16, #tpu.memory_space<vmem>>, %arg8: memref<32x1xf32, #tpu.memory_space<vmem>>, %arg9: memref<32x1xf32, #tpu.memory_space<vmem>>, %arg10: memref<32x1xf32, #tpu.memory_space<vmem>>, %arg11: memref<32x1xf32, #tpu.memory_space<vmem>>, %arg12: memref<1x1xf32, #tpu.memory_space<vmem>>, %arg13: memref<1x1x16xf32, #tpu.memory_space<vmem>>, %arg14: memref<8x145xbf16, #tpu.memory_space<vmem>>, %arg15: memref<32x145xbf16, #tpu.memory_space<vmem>>) attributes {dimension_semantics = [#tpu.dimension_semantics<parallel>], iteration_bounds = array<i64: 2>, scalar_prefetch = 0 : i64, scratch_operands = 2 : i64, tpu.core_type = #tpu.core_type<tc>, window_params = [{transform_indices = @transform_0, window_bounds = array<i64: 1, 8, 16>}, {transform_indices = @transform_1, window_bounds = array<i64: 1, 1, 16>}, {pipeline_mode = #tpu.pipeline_mode<synchronous>, transform_indices = @transform_2, window_bounds = array<i64: 3, 32, 8>}, {pipeline_mode = #tpu.pipeline_mode<synchronous>, transform_indices = @transform_3, window_bounds = array<i64: 32, 1>}, {pipeline_mode = #tpu.pipeline_mode<synchronous>, transform_indices = @transform_4, window_bounds = array<i64: 32, 1>}, {pipeline_mode = #tpu.pipeline_mode<synchronous>, transform_indices = @transform_5, window_bounds = array<i64: 32, 1>}, {pipeline_mode = #tpu.pipeline_mode<synchronous>, transform_indices = @transform_6, window_bounds = array<i64: 3, 32, 32>}, {pipeline_mode = #tpu.pipeline_mode<synchronous>, transform_indices = @transform_7, window_bounds = array<i64: 32, 1>}, {pipeline_mode = #tpu.pipeline_mode<synchronous>, transform_indices = @transform_8, window_bounds = array<i64: 32, 1>}, {pipeline_mode = #tpu.pipeline_mode<synchronous>, transform_indices = @transform_9, window_bounds = array<i64: 32, 1>}, {pipeline_mode = #tpu.pipeline_mode<synchronous>, transform_indices = @transform_10, window_bounds = array<i64: 32, 1>}, {pipeline_mode = #tpu.pipeline_mode<synchronous>, transform_indices = @transform_11, window_bounds = array<i64: 1, 1>}, {transform_indices = @transform_12, window_bounds = array<i64: 1, 1, 16>}]} {
    %c0 = arith.constant 0 : index
    %c0_0 = arith.constant 0 : index
    %c0_1 = arith.constant 0 : index
    %0 = vector.load %arg2[%c0, %c0_0, %c0_1] : memref<1x1x16xf32, #tpu.memory_space<vmem>>, vector<1x1x16xf32>
    %1 = vector.shape_cast %0 : vector<1x1x16xf32> to vector<1x16xf32>
    %2 = arith.truncf %1 : vector<1x16xf32> to vector<1x16xbf16>
    %cst = arith.constant 0.000000e+00 : bf16
    %3 = vector.broadcast %cst : bf16 to vector<8x1xbf16>
    %c0_2 = arith.constant 0 : index
    %c127 = arith.constant 127 : index
    %4 = vector.load %arg14[%c0_2, %c127] : memref<8x145xbf16, #tpu.memory_space<vmem>>, vector<8x1xbf16>
    tpu.vector_store %arg14[%c0_2, %c127], %3 {strides = array<i32>} : memref<8x145xbf16, #tpu.memory_space<vmem>>, vector<8x1xbf16>,
    %cst_3 = arith.constant 0.000000e+00 : bf16
    %5 = vector.broadcast %cst_3 : bf16 to vector<8x1xbf16>
    %c0_4 = arith.constant 0 : index
    %c144 = arith.constant 144 : index
    %6 = vector.load %arg14[%c0_4, %c144] : memref<8x145xbf16, #tpu.memory_space<vmem>>, vector<8x1xbf16>
    tpu.vector_store %arg14[%c0_4, %c144], %5 {strides = array<i32>} : memref<8x145xbf16, #tpu.memory_space<vmem>>, vector<8x1xbf16>,
    %cst_5 = arith.constant 0.000000e+00 : bf16
    %7 = vector.broadcast %cst_5 : bf16 to vector<32x1xbf16>
    %c0_6 = arith.constant 0 : index
    %c127_7 = arith.constant 127 : index
    %8 = vector.load %arg15[%c0_6, %c127_7] : memref<32x145xbf16, #tpu.memory_space<vmem>>, vector<32x1xbf16>
    tpu.vector_store %arg15[%c0_6, %c127_7], %7 {strides = array<i32>} : memref<32x145xbf16, #tpu.memory_space<vmem>>, vector<32x1xbf16>,
    %cst_8 = arith.constant 0.000000e+00 : bf16
    %9 = vector.broadcast %cst_8 : bf16 to vector<32x1xbf16>
    %c0_9 = arith.constant 0 : index
    %c144_10 = arith.constant 144 : index
    %10 = vector.load %arg15[%c0_9, %c144_10] : memref<32x145xbf16, #tpu.memory_space<vmem>>, vector<32x1xbf16>
    tpu.vector_store %arg15[%c0_9, %c144_10], %9 {strides = array<i32>} : memref<32x145xbf16, #tpu.memory_space<vmem>>, vector<32x1xbf16>,
    %c0_11 = arith.constant 0 : index
    %c0_12 = arith.constant 0 : index
    %c0_13 = arith.constant 0 : index
    %11 = vector.load %arg1[%c0_11, %c0_12, %c0_13] : memref<1x8x16xbf16, #tpu.memory_space<vmem>>, vector<1x8x16xbf16>
    %12 = vector.shape_cast %11 : vector<1x8x16xbf16> to vector<8x16xbf16>
    %13 = vector.broadcast %2 : vector<1x16xbf16> to vector<8x16xbf16>
    %14 = arith.mulf %12, %13 : vector<8x16xbf16>
    %c0_14 = arith.constant 0 : index
    %c128 = arith.constant 128 : index
    %15 = vector.load %arg14[%c0_14, %c128] : memref<8x145xbf16, #tpu.memory_space<vmem>>, vector<8x16xbf16>
    tpu.vector_store %arg14[%c0_14, %c128], %14 {strides = array<i32>} : memref<8x145xbf16, #tpu.memory_space<vmem>>, vector<8x16xbf16>,
    %c0_15 = arith.constant 0 : index
    %c0_16 = arith.constant 0 : index
    %c0_17 = arith.constant 0 : index
    %16 = vector.load %arg3[%c0_15, %c0_16, %c0_17] : memref<3x32x8xbf16, #tpu.memory_space<vmem>>, vector<1x32x8xbf16>
    %17 = vector.shape_cast %16 : vector<1x32x8xbf16> to vector<32x8xbf16>
    %c0_18 = arith.constant 0 : index
    %c127_19 = arith.constant 127 : index
    %18 = vector.load %arg14[%c0_18, %c127_19] : memref<8x145xbf16, #tpu.memory_space<vmem>>, vector<8x16xbf16>
    %cst_20 = arith.constant dense<0.000000e+00> : vector<32x16xf32>
    %19 = tpu.matmul %17, %18, %cst_20 {dimension_numbers = #tpu.dot_dimension_numbers<[1], [0], [0], [1], [0, 0, 1, 1], [], []>} : vector<32x8xbf16>, vector<8x16xbf16>, vector<32x16xf32> -> vector<32x16xf32>
    %c1 = arith.constant 1 : index
    %c0_21 = arith.constant 0 : index
    %c0_22 = arith.constant 0 : index
    %20 = vector.load %arg3[%c1, %c0_21, %c0_22] : memref<3x32x8xbf16, #tpu.memory_space<vmem>>, vector<1x32x8xbf16>
    %21 = vector.shape_cast %20 : vector<1x32x8xbf16> to vector<32x8xbf16>
    %c0_23 = arith.constant 0 : index
    %c128_24 = arith.constant 128 : index
    %22 = vector.load %arg14[%c0_23, %c128_24] : memref<8x145xbf16, #tpu.memory_space<vmem>>, vector<8x16xbf16>
    %cst_25 = arith.constant dense<0.000000e+00> : vector<32x16xf32>
    %23 = tpu.matmul %21, %22, %cst_25 {dimension_numbers = #tpu.dot_dimension_numbers<[1], [0], [0], [1], [0, 0, 1, 1], [], []>} : vector<32x8xbf16>, vector<8x16xbf16>, vector<32x16xf32> -> vector<32x16xf32>
    %24 = arith.addf %19, %23 : vector<32x16xf32>
    %c2 = arith.constant 2 : index
    %c0_26 = arith.constant 0 : index
    %c0_27 = arith.constant 0 : index
    %25 = vector.load %arg3[%c2, %c0_26, %c0_27] : memref<3x32x8xbf16, #tpu.memory_space<vmem>>, vector<1x32x8xbf16>
    %26 = vector.shape_cast %25 : vector<1x32x8xbf16> to vector<32x8xbf16>
    %c0_28 = arith.constant 0 : index
    %c129 = arith.constant 129 : index
    %27 = vector.load %arg14[%c0_28, %c129] : memref<8x145xbf16, #tpu.memory_space<vmem>>, vector<8x16xbf16>
    %cst_29 = arith.constant dense<0.000000e+00> : vector<32x16xf32>
    %28 = tpu.matmul %26, %27, %cst_29 {dimension_numbers = #tpu.dot_dimension_numbers<[1], [0], [0], [1], [0, 0, 1, 1], [], []>} : vector<32x8xbf16>, vector<8x16xbf16>, vector<32x16xf32> -> vector<32x16xf32>
    %29 = arith.addf %24, %28 : vector<32x16xf32>
    %c0_30 = arith.constant 0 : index
    %c0_31 = arith.constant 0 : index
    %30 = vector.load %arg4[%c0_30, %c0_31] : memref<32x1xf32, #tpu.memory_space<vmem>>, vector<32x1xf32>
    %31 = vector.broadcast %30 : vector<32x1xf32> to vector<32x16xf32>
    %32 = arith.addf %29, %31 : vector<32x16xf32>
    %cst_32 = arith.constant 0.000000e+00 : f32
    %33 = vector.broadcast %cst_32 : f32 to vector<32x16xf32>
    %34 = arith.maximumf %32, %33 : vector<32x16xf32>
    %cst_33 = arith.constant dense<0.000000e+00> : vector<16xf32>
    %35 = vector.multi_reduction <add>, %34, %cst_33 [0] : vector<32x16xf32> to vector<16xf32>
    %36 = vector.shape_cast %35 : vector<16xf32> to vector<1x16xf32>
    %cst_34 = arith.constant 3.125000e-02 : f32
    %37 = vector.broadcast %cst_34 : f32 to vector<1x16xf32>
    %38 = arith.mulf %36, %37 : vector<1x16xf32>
    %39 = arith.mulf %34, %34 : vector<32x16xf32>
    %cst_35 = arith.constant dense<0.000000e+00> : vector<16xf32>
    %40 = vector.multi_reduction <add>, %39, %cst_35 [0] : vector<32x16xf32> to vector<16xf32>
    %41 = vector.shape_cast %40 : vector<16xf32> to vector<1x16xf32>
    %cst_36 = arith.constant 3.125000e-02 : f32
    %42 = vector.broadcast %cst_36 : f32 to vector<1x16xf32>
    %43 = arith.mulf %41, %42 : vector<1x16xf32>
    %44 = arith.mulf %38, %38 : vector<1x16xf32>
    %45 = arith.subf %43, %44 : vector<1x16xf32>
    %cst_37 = arith.constant 0.000000e+00 : f32
    %46 = vector.broadcast %cst_37 : f32 to vector<1x16xf32>
    %47 = arith.maximumf %45, %46 : vector<1x16xf32>
    %48 = vector.broadcast %38 : vector<1x16xf32> to vector<32x16xf32>
    %49 = arith.subf %34, %48 : vector<32x16xf32>
    %cst_38 = arith.constant 9.99999974E-5 : f32
    %50 = vector.broadcast %cst_38 : f32 to vector<1x16xf32>
    %51 = arith.addf %47, %50 : vector<1x16xf32>
    %52 = math.rsqrt %51 : vector<1x16xf32>
    %53 = vector.broadcast %52 : vector<1x16xf32> to vector<32x16xf32>
    %54 = arith.mulf %49, %53 : vector<32x16xf32>
    %c0_39 = arith.constant 0 : index
    %c0_40 = arith.constant 0 : index
    %55 = vector.load %arg5[%c0_39, %c0_40] : memref<32x1xf32, #tpu.memory_space<vmem>>, vector<32x1xf32>
    %56 = vector.broadcast %55 : vector<32x1xf32> to vector<32x16xf32>
    %57 = arith.mulf %54, %56 : vector<32x16xf32>
    %c0_41 = arith.constant 0 : index
    %c0_42 = arith.constant 0 : index
    %58 = vector.load %arg6[%c0_41, %c0_42] : memref<32x1xf32, #tpu.memory_space<vmem>>, vector<32x1xf32>
    %59 = vector.broadcast %58 : vector<32x1xf32> to vector<32x16xf32>
    %60 = arith.addf %57, %59 : vector<32x16xf32>
    %61 = vector.broadcast %1 : vector<1x16xf32> to vector<32x16xf32>
    %62 = arith.mulf %60, %61 : vector<32x16xf32>
    %63 = arith.truncf %62 : vector<32x16xf32> to vector<32x16xbf16>
    %c0_43 = arith.constant 0 : index
    %c128_44 = arith.constant 128 : index
    %64 = vector.load %arg15[%c0_43, %c128_44] : memref<32x145xbf16, #tpu.memory_space<vmem>>, vector<32x16xbf16>
    tpu.vector_store %arg15[%c0_43, %c128_44], %63 {strides = array<i32>} : memref<32x145xbf16, #tpu.memory_space<vmem>>, vector<32x16xbf16>,
    %c0_45 = arith.constant 0 : index
    %c0_46 = arith.constant 0 : index
    %c0_47 = arith.constant 0 : index
    %65 = vector.load %arg7[%c0_45, %c0_46, %c0_47] : memref<3x32x32xbf16, #tpu.memory_space<vmem>>, vector<1x32x32xbf16>
    %66 = vector.shape_cast %65 : vector<1x32x32xbf16> to vector<32x32xbf16>
    %c0_48 = arith.constant 0 : index
    %c127_49 = arith.constant 127 : index
    %67 = vector.load %arg15[%c0_48, %c127_49] : memref<32x145xbf16, #tpu.memory_space<vmem>>, vector<32x16xbf16>
    %cst_50 = arith.constant dense<0.000000e+00> : vector<32x16xf32>
    %68 = tpu.matmul %66, %67, %cst_50 {dimension_numbers = #tpu.dot_dimension_numbers<[1], [0], [0], [1], [0, 0, 1, 1], [], []>} : vector<32x32xbf16>, vector<32x16xbf16>, vector<32x16xf32> -> vector<32x16xf32>
    %c1_51 = arith.constant 1 : index
    %c0_52 = arith.constant 0 : index
    %c0_53 = arith.constant 0 : index
    %69 = vector.load %arg7[%c1_51, %c0_52, %c0_53] : memref<3x32x32xbf16, #tpu.memory_space<vmem>>, vector<1x32x32xbf16>
    %70 = vector.shape_cast %69 : vector<1x32x32xbf16> to vector<32x32xbf16>
    %c0_54 = arith.constant 0 : index
    %c128_55 = arith.constant 128 : index
    %71 = vector.load %arg15[%c0_54, %c128_55] : memref<32x145xbf16, #tpu.memory_space<vmem>>, vector<32x16xbf16>
    %cst_56 = arith.constant dense<0.000000e+00> : vector<32x16xf32>
    %72 = tpu.matmul %70, %71, %cst_56 {dimension_numbers = #tpu.dot_dimension_numbers<[1], [0], [0], [1], [0, 0, 1, 1], [], []>} : vector<32x32xbf16>, vector<32x16xbf16>, vector<32x16xf32> -> vector<32x16xf32>
    %73 = arith.addf %68, %72 : vector<32x16xf32>
    %c2_57 = arith.constant 2 : index
    %c0_58 = arith.constant 0 : index
    %c0_59 = arith.constant 0 : index
    %74 = vector.load %arg7[%c2_57, %c0_58, %c0_59] : memref<3x32x32xbf16, #tpu.memory_space<vmem>>, vector<1x32x32xbf16>
    %75 = vector.shape_cast %74 : vector<1x32x32xbf16> to vector<32x32xbf16>
    %c0_60 = arith.constant 0 : index
    %c129_61 = arith.constant 129 : index
    %76 = vector.load %arg15[%c0_60, %c129_61] : memref<32x145xbf16, #tpu.memory_space<vmem>>, vector<32x16xbf16>
    %cst_62 = arith.constant dense<0.000000e+00> : vector<32x16xf32>
    %77 = tpu.matmul %75, %76, %cst_62 {dimension_numbers = #tpu.dot_dimension_numbers<[1], [0], [0], [1], [0, 0, 1, 1], [], []>} : vector<32x32xbf16>, vector<32x16xbf16>, vector<32x16xf32> -> vector<32x16xf32>
    %78 = arith.addf %73, %77 : vector<32x16xf32>
    %c0_63 = arith.constant 0 : index
    %c0_64 = arith.constant 0 : index
    %79 = vector.load %arg8[%c0_63, %c0_64] : memref<32x1xf32, #tpu.memory_space<vmem>>, vector<32x1xf32>
    %80 = vector.broadcast %79 : vector<32x1xf32> to vector<32x16xf32>
    %81 = arith.addf %78, %80 : vector<32x16xf32>
    %cst_65 = arith.constant 0.000000e+00 : f32
    %82 = vector.broadcast %cst_65 : f32 to vector<32x16xf32>
    %83 = arith.maximumf %81, %82 : vector<32x16xf32>
    %cst_66 = arith.constant dense<0.000000e+00> : vector<16xf32>
    %84 = vector.multi_reduction <add>, %83, %cst_66 [0] : vector<32x16xf32> to vector<16xf32>
    %85 = vector.shape_cast %84 : vector<16xf32> to vector<1x16xf32>
    %cst_67 = arith.constant 3.125000e-02 : f32
    %86 = vector.broadcast %cst_67 : f32 to vector<1x16xf32>
    %87 = arith.mulf %85, %86 : vector<1x16xf32>
    %88 = arith.mulf %83, %83 : vector<32x16xf32>
    %cst_68 = arith.constant dense<0.000000e+00> : vector<16xf32>
    %89 = vector.multi_reduction <add>, %88, %cst_68 [0] : vector<32x16xf32> to vector<16xf32>
    %90 = vector.shape_cast %89 : vector<16xf32> to vector<1x16xf32>
    %cst_69 = arith.constant 3.125000e-02 : f32
    %91 = vector.broadcast %cst_69 : f32 to vector<1x16xf32>
    %92 = arith.mulf %90, %91 : vector<1x16xf32>
    %93 = arith.mulf %87, %87 : vector<1x16xf32>
    %94 = arith.subf %92, %93 : vector<1x16xf32>
    %cst_70 = arith.constant 0.000000e+00 : f32
    %95 = vector.broadcast %cst_70 : f32 to vector<1x16xf32>
    %96 = arith.maximumf %94, %95 : vector<1x16xf32>
    %97 = vector.broadcast %87 : vector<1x16xf32> to vector<32x16xf32>
    %98 = arith.subf %83, %97 : vector<32x16xf32>
    %cst_71 = arith.constant 9.99999974E-5 : f32
    %99 = vector.broadcast %cst_71 : f32 to vector<1x16xf32>
    %100 = arith.addf %96, %99 : vector<1x16xf32>
    %101 = math.rsqrt %100 : vector<1x16xf32>
    %102 = vector.broadcast %101 : vector<1x16xf32> to vector<32x16xf32>
    %103 = arith.mulf %98, %102 : vector<32x16xf32>
    %c0_72 = arith.constant 0 : index
    %c0_73 = arith.constant 0 : index
    %104 = vector.load %arg9[%c0_72, %c0_73] : memref<32x1xf32, #tpu.memory_space<vmem>>, vector<32x1xf32>
    %105 = vector.broadcast %104 : vector<32x1xf32> to vector<32x16xf32>
    %106 = arith.mulf %103, %105 : vector<32x16xf32>
    %c0_74 = arith.constant 0 : index
    %c0_75 = arith.constant 0 : index
    %107 = vector.load %arg10[%c0_74, %c0_75] : memref<32x1xf32, #tpu.memory_space<vmem>>, vector<32x1xf32>
    %108 = vector.broadcast %107 : vector<32x1xf32> to vector<32x16xf32>
    %109 = arith.addf %106, %108 : vector<32x16xf32>
    %110 = vector.broadcast %1 : vector<1x16xf32> to vector<32x16xf32>
    %111 = arith.mulf %109, %110 : vector<32x16xf32>
    %c0_76 = arith.constant 0 : index
    %c0_77 = arith.constant 0 : index
    %112 = vector.load %arg11[%c0_76, %c0_77] : memref<32x1xf32, #tpu.memory_space<vmem>>, vector<32x1xf32>
    %113 = vector.broadcast %112 : vector<32x1xf32> to vector<32x16xf32>
    %114 = arith.mulf %111, %113 : vector<32x16xf32>
    %cst_78 = arith.constant dense<0.000000e+00> : vector<16xf32>
    %115 = vector.multi_reduction <add>, %114, %cst_78 [0] : vector<32x16xf32> to vector<16xf32>
    %116 = vector.shape_cast %115 : vector<16xf32> to vector<1x16xf32>
    %c0_79 = arith.constant 0 : index
    %c0_80 = arith.constant 0 : index
    %117 = vector.load %arg12[%c0_79, %c0_80] : memref<1x1xf32, #tpu.memory_space<vmem>>, vector<1x1xf32>
    %118 = vector.broadcast %117 : vector<1x1xf32> to vector<1x16xf32>
    %119 = arith.addf %116, %118 : vector<1x16xf32>
    %120 = arith.mulf %119, %1 : vector<1x16xf32>
    %c0_81 = arith.constant 0 : index
    %c0_82 = arith.constant 0 : index
    %c0_83 = arith.constant 0 : index
    %121 = vector.load %arg13[%c0_81, %c0_82, %c0_83] : memref<1x1x16xf32, #tpu.memory_space<vmem>>, vector<1x1x16xf32>
    %122 = vector.shape_cast %121 : vector<1x1x16xf32> to vector<1x16xf32>
    %123 = vector.shape_cast %120 : vector<1x16xf32> to vector<1x1x16xf32>
    tpu.vector_store %arg13[%c0_81, %c0_82, %c0_83], %123 {strides = array<i32>} : memref<1x1x16xf32, #tpu.memory_space<vmem>>, vector<1x1x16xf32>,
    return
  }
  func.func @transform_0(%arg0: i32) -> (i32, i32, i32) {
    %c0_i32 = arith.constant 0 : i32
    %c0_i32_0 = arith.constant 0 : i32
    %c0_i32_1 = arith.constant 0 : i32
    return %arg0, %c0_i32, %c0_i32_0 : i32, i32, i32
  }
  func.func @transform_1(%arg0: i32) -> (i32, i32, i32) {
    %c0_i32 = arith.constant 0 : i32
    %c0_i32_0 = arith.constant 0 : i32
    %c0_i32_1 = arith.constant 0 : i32
    return %arg0, %c0_i32, %c0_i32_0 : i32, i32, i32
  }
  func.func @transform_2(%arg0: i32) -> (i32, i32, i32) {
    %c0_i32 = arith.constant 0 : i32
    %c0_i32_0 = arith.constant 0 : i32
    %c0_i32_1 = arith.constant 0 : i32
    %c0_i32_2 = arith.constant 0 : i32
    return %c0_i32, %c0_i32_0, %c0_i32_1 : i32, i32, i32
  }
  func.func @transform_3(%arg0: i32) -> (i32, i32) {
    %c0_i32 = arith.constant 0 : i32
    %c0_i32_0 = arith.constant 0 : i32
    %c0_i32_1 = arith.constant 0 : i32
    return %c0_i32, %c0_i32_0 : i32, i32
  }
  func.func @transform_4(%arg0: i32) -> (i32, i32) {
    %c0_i32 = arith.constant 0 : i32
    %c0_i32_0 = arith.constant 0 : i32
    %c0_i32_1 = arith.constant 0 : i32
    return %c0_i32, %c0_i32_0 : i32, i32
  }
  func.func @transform_5(%arg0: i32) -> (i32, i32) {
    %c0_i32 = arith.constant 0 : i32
    %c0_i32_0 = arith.constant 0 : i32
    %c0_i32_1 = arith.constant 0 : i32
    return %c0_i32, %c0_i32_0 : i32, i32
  }
  func.func @transform_6(%arg0: i32) -> (i32, i32, i32) {
    %c0_i32 = arith.constant 0 : i32
    %c0_i32_0 = arith.constant 0 : i32
    %c0_i32_1 = arith.constant 0 : i32
    %c0_i32_2 = arith.constant 0 : i32
    return %c0_i32, %c0_i32_0, %c0_i32_1 : i32, i32, i32
  }
  func.func @transform_7(%arg0: i32) -> (i32, i32) {
    %c0_i32 = arith.constant 0 : i32
    %c0_i32_0 = arith.constant 0 : i32
    %c0_i32_1 = arith.constant 0 : i32
    return %c0_i32, %c0_i32_0 : i32, i32
  }
  func.func @transform_8(%arg0: i32) -> (i32, i32) {
    %c0_i32 = arith.constant 0 : i32
    %c0_i32_0 = arith.constant 0 : i32
    %c0_i32_1 = arith.constant 0 : i32
    return %c0_i32, %c0_i32_0 : i32, i32
  }
  func.func @transform_9(%arg0: i32) -> (i32, i32) {
    %c0_i32 = arith.constant 0 : i32
    %c0_i32_0 = arith.constant 0 : i32
    %c0_i32_1 = arith.constant 0 : i32
    return %c0_i32, %c0_i32_0 : i32, i32
  }
  func.func @transform_10(%arg0: i32) -> (i32, i32) {
    %c0_i32 = arith.constant 0 : i32
    %c0_i32_0 = arith.constant 0 : i32
    %c0_i32_1 = arith.constant 0 : i32
    return %c0_i32, %c0_i32_0 : i32, i32
  }
  func.func @transform_11(%arg0: i32) -> (i32, i32) {
    %c0_i32 = arith.constant 0 : i32
    %c0_i32_0 = arith.constant 0 : i32
    %c0_i32_1 = arith.constant 0 : i32
    return %c0_i32, %c0_i32_0 : i32, i32
  }
  func.func @transform_12(%arg0: i32) -> (i32, i32, i32) {
    %c0_i32 = arith.constant 0 : i32
    %c0_i32_0 = arith.constant 0 : i32
    %c0_i32_1 = arith.constant 0 : i32
    return %arg0, %c0_i32, %c0_i32_0 : i32, i32, i32
  }
}

</mosaic_0001>

<bundles_post_ra>
// kernel: tpu_custom_call.1
= control target key start
LH: loop header
LB: loop body
LE: loop exit
PB: predicated region body
PF: predicated region fallthrough
CT: control target
= control target key end

     0   :  { %s2017_s0 = inlined_call_operand.vmem [shape: bf16[2,8,16], index: 0, kind: input, shape index: {}]   ;;  %s2018_s1 = inlined_call_operand.vmem [shape: f32[2,1,16], index: 1, kind: input, shape index: {}]   ;;  %s2019_s2 = inlined_call_operand.vmem [shape: bf16[3,32,8], index: 2, kind: input, shape index: {}]   ;;  %s2020_s3 = inlined_call_operand.vmem [shape: f32[32,1], index: 3, kind: input, shape index: {}]   ;;  %s2021_s4 = inlined_call_operand.vmem [shape: f32[32,1], index: 4, kind: input, shape index: {}]   ;;  %s2022_s5 = inlined_call_operand.vmem [shape: f32[32,1], index: 5, kind: input, shape index: {}]   ;;  %s2023_s6 = inlined_call_operand.vmem [shape: bf16[3,32,32], index: 6, kind: input, shape index: {}]   ;;  %s2024_s7 = inlined_call_operand.vmem [shape: f32[32,1], index: 7, kind: input, shape index: {}]   ;;  %s2025_s8 = inlined_call_operand.vmem [shape: f32[32,1], index: 8, kind: input, shape index: {}]   ;;  %s2026_s9 = inlined_call_operand.vmem [shape: f32[32,1], index: 9, kind: input, shape index: {}]   ;;  %s2027_s10 = inlined_call_operand.vmem [shape: f32[32,1], index: 10, kind: input, shape index: {}]   ;;  %s2028_s11 = inlined_call_operand.<no memory space> [shape: f32[1,1], index: 11, kind: input, shape index: {}]   ;;  %s2029_s12 = inlined_call_operand.hbm [shape: f32[2,1,16], index: 12, kind: output, shape index: {}]  }
   0x1   :  { %2034 = sst [smem:[#allocation8_spill]] %s2017_s0  ;;  %v17_v0 = vstv %s2028_s11 }
   0x2   :  { %2035 = sst [smem:[#allocation9_spill]] %s2018_s1  ;;  %18 = vst [vmem:[#allocation4] sm:$0x1] %v17_v0 }
   0x3   :  { %19 = vsyncpa [#allocation6], 0 }
   0x4   :  { %21 = vsyncpa [#allocation6 + $0x1], 0  ;;  %s1729_s23 = smov 0   ;;  %s1731_s24 = smov 0  }
   0x5   :  { %s1733_s25 = smov 0   ;;  %s1735_s26 = smov 0  }
   0x6 LB: > { %s1750_s11 = sadd.s32 4294967295, %s1655_s26   ;;  %s1393_s27 = sadd.s32 4294967294, %s1655_s26   ;;  %s1655_s26 = sphi %s1735_s26, %s2045_s26   ;;  %s1651_s25 = sphi %s1733_s25, %s2044_s25   ;;  %s1647_s24 = sphi %s1731_s24, %s2043_s24   ;;  %s1643_s23 = sphi %s1729_s23, %s2042_s23  }
   0x7   : > { %s1754_s28 = sadd.s32 1, %s1655_s26   ;;  %s296_s29 = sadd.s32 1, %s1651_s25 }
   0x8   : > { %s293_s30 = ssub.s32 %s1655_s26, %s1754_s28  ;;  %p306_p0 = scmp.ne.s32.totalorder %s1651_s25, %s1647_s24 }
   0x9   : > { %p294_p1 = scmp.eq.s32.totalorder %s293_s30, 0  ;;  %p307_p2 = scmp.eq.s32.totalorder %s1750_s11, 1 }
   0xa   : > { %p312_p3 = scmp.ne.s32.totalorder %s1647_s24, %s1643_s23  ;;  %p313_p4 = scmp.eq.s32.totalorder %s1393_s27, 1 }
   0xb   : > { %s1765_s13 = scalar_select %p294_p1, %s1651_s25, %s296_s29  }
   0xc   : > { %p1767_p5 = por %p307_p2, %p306_p0  ;;  %p1771_p6 = por %p313_p4, %p312_p3 }
   0xd   : > { %p1396_p7 = scmp.ge.s32.totalorder %s1655_s26, 1  ;;  %p374_p8 = scmp.lt.s32.totalorder %s1655_s26, 3 }
   0xf   : > { %p375_p9 = pnand %p1396_p7, %p374_p8 }
  0x10   : > { %p417_p10 = scmp.lt.s32.totalorder (!%p375_p9), %s1750_s11, 1  ;;  %s2038_s1 = sld [smem:[#allocation9_spill]] (!%p375_p9) }
  0x11   : > { %378 = sbr.rel (%p375_p9) target bundleno = 859 (0x35b), region = 68  ;;  %s2039_s0 = sld [smem:[#allocation8_spill]] (!%p375_p9) }
  0x12   : > { %s2030_s27 = smov (!%p375_p9), 127   ;;  %s2041_s21 = smov (!%p375_p9), 127  }
  0x13   : > { %s1451_s20 = sshll.u32 (!%p375_p9), %s1750_s11, 4 }
  0x16   : > { %vm427_vm0 = vcmask 1044472   ;;  %vm429_vm1 = vcmask 134272   ;;  %v443_v1 = vlaneseq  ;;  %v1571_v2 = vld [vmem:[%s2019_s2 + $0x10] sm:$0xff]   ;;  %v1657_v3 = vmov 0   ;;  %s418_s18 = scalar_select %p417_p10, %s1750_s11, 1  ;;  %v1575_v12 = vld [vmem:[%s2019_s2] sm:$0xff]  }
  0x17   : > { %428 = vst.msk [vmem:[#allocation2] sm:$0xf] %vm427_vm0, %v1657_v3  ;;  %431 = vst.msk [vmem:[#allocation3] sm:$0xf] %vm427_vm0, %v1657_v3  ;;  %vm471_vm2 = vcmask 64512   ;;  %1566 = vset.pattern.permute.xlu1 %v1657_v3  ;;  %1567 = vset.pattern.permute.xlu0 %v1657_v3  ;;  %vm448_vm3 = vcmask 125952  }
  0x18   : > { %430 = vst.msk [vmem:[#allocation2 + $0x4] sm:$0xf] %vm429_vm1, %v1657_v3  ;;  %435 = vst.msk [vmem:[#allocation3 + $0x4] sm:$0xf] %vm429_vm1, %v1657_v3  ;;  %v444_v4 = vshrl.u32 %v443_v1, 7  ;;  %1481 = vmatprep.mubr.msk.bf16.mxu0 %vm471_vm2, %v1571_v2  ;;  %s1397_s19 = sshll.u32 %s418_s18, 2  ;;  %s423_s22 = scalar_lea.vmem %s2038_s1, %s418_s18  ;;  %1487 = vmatprep.mubr.msk.bf16.mxu1 %vm471_vm2, %v1575_v12 }
  0x19   : > { %432 = vst.msk [vmem:[#allocation3 + $0x8] sm:$0xf] %vm427_vm0, %v1657_v3  ;;  %433 = vst.msk [vmem:[#allocation3 + $0x10] sm:$0xf] %vm427_vm0, %v1657_v3  ;;  %s420_s30 = scalar_lea.vmem %s2039_s0, %s1397_s19  ;;  %v1791_v5 = vld [vmem:[%s423_s22] sm:$0x1] }
  0x1a   : > { %434 = vst.msk [vmem:[#allocation3 + $0x18] sm:$0xf] %vm427_vm0, %v1657_v3  ;;  %v426_v6 = vpack.c.bf16 %v1791_v5, %v1791_v5  ;;  %v1795_v7 = vsub.s32 0, %v444_v4  ;;  %v439_v8 = vld [vmem:[%s420_s30] sm:$0xf]  ;;  %vm478_vm4 = vcmask 1043456  }
  0x1b   : > { %436 = vst.msk [vmem:[#allocation3 + $0xc] sm:$0xf] %vm429_vm1, %v1657_v3  ;;  %437 = vst.msk [vmem:[#allocation3 + $0x14] sm:$0xf] %vm429_vm1, %v1657_v3  ;;  %v1572_v18 = vld [vmem:[%s2019_s2 + $0x18] sm:$0xff]   ;;  %v1573_v19 = vld [vmem:[%s2019_s2 + $0x20] sm:$0xff]  }
  0x1c   : > { %438 = vst.msk [vmem:[#allocation3 + $0x1c] sm:$0xf] %vm429_vm1, %v1657_v3  ;;  %v441_v9 = vpack.i.b16 %v426_v6, %v426_v6  ;;  %s2032_s22 = smov 1   ;;  %v692_v21 = vld [vmem:[%s2020_s3] sm:$0xff]  ;;  %v694_v22 = vld [vmem:[%s2020_s3 + $0x10] sm:$0xff]  ;;  %v693_v23 = vld [vmem:[%s2020_s3 + $0x8] sm:$0xff] }
  0x1d   : > { %v695_v24 = vld [vmem:[%s2020_s3 + $0x18] sm:$0xff]  ;;  %v772_v25 = vld [vmem:[%s2021_s4 + $0x10] sm:$0xff]  ;;  %v770_v29 = vld [vmem:[%s2021_s4] sm:$0xff]  ;;  %vm550_vm5 = vcmask 7168   ;;  %vm724_vm6 = vcmask 130048   ;;  %vm895_vm7 = vcmask 261120  }
  0x1e   : > { %v446_v10 = vrot.slane %v441_v9, %v1795_v7  ;;  %v773_v26 = vld [vmem:[%s2021_s4 + $0x18] sm:$0xff]  ;;  %v800_v27 = vld [vmem:[%s2022_s5 + $0x10] sm:$0xff]  ;;  %v771_v30 = vld [vmem:[%s2021_s4 + $0x8] sm:$0xff]  ;;  %s415_s19 = sand.u32 1, %s1647_s24   ;;  %vm1314_vm8 = vcmask 122880   ;;  %s1660_s18 = smov [#allocation5]  }
  0x1f   : > { %v801_v28 = vld [vmem:[%s2022_s5 + $0x18] sm:$0xff]  ;;  %v798_v31 = vld [vmem:[%s2022_s5] sm:$0xff]  ;;  %v799_v32 = vld [vmem:[%s2022_s5 + $0x8] sm:$0xff]  ;;  %s1317_s16 = scalar_lea.sflag [#allocation6], %s415_s19  ;;  %s1599_s11 = sshll.u32 %s1660_s18, 4  ;;  %s1600_s11 = int_to_ptr.vmem [resolvable:$false] %s1599_s11 }
  0x20   : > { %v447_v11 = vmul.bf16 %v446_v10, %v439_v8  ;;  %v1574_v36 = vld [vmem:[%s2019_s2 + $0x28] sm:$0xff]   ;;  %s1601_s0 = scalar_lea.vmem %s1600_s11, 32 }
  0x21   : > { %v1576_v40 = vld [vmem:[%s2019_s2 + $0x8] sm:$0xff]  }
  0x22   : > { %449 = vst.msk [vmem:[#allocation2 + $0x4] sm:$0xf] %vm448_vm3, %v447_v11 }
  0x29   : > { %v454_v13 = vld [vmem:[#allocation2] sm:$0xff] }
  0x2a   : > { %v460_v14 = vld [vmem:[#allocation2 + $0x4] sm:$0xf]  ;;  %v1408_v15 = vcombine.low %v454_v13, %v454_v13  ;;  %v1409_v20 = vcombine.high %v454_v13, %v454_v13 }
  0x2b   : > { %v1418_v16 = vcombine.low %v460_v14, %v460_v14  ;;  %1521 = vmatprep.subr.msk.bf16.mxu0 %vm478_vm4, %v460_v14  ;;  %v480_v17 = vsel %vm478_vm4, %v460_v14, 0 }
  0x2c   : > { %1480 = vmatpush3.bf16.msra.mxu0 %v480_v17  ;;  %546 = vrot.lane.b32.xlu0 %v1408_v15, %s2032_s22 }
  0x2d   : > { %628 = vrot.lane.b32.xlu1 %v1418_v16, %s2030_s27  ;;  %s1327_s27 = scalar_lea.hbm %s2029_s12, %s1451_s20 }
  0x2f   : > { %1482 = vmatmul.mubr.msk.bf16.vlgmr.msra.gmra.mxu0 %vm471_vm2, %v1572_v18 }
  0x30   : > { %1493 = vmatprep.mubr.msk.bf16.mxu0 %vm471_vm2, %v1573_v19  ;;  %548 = vrot.lane.b32.xlu0 %v1409_v20, %s2032_s22  ;;  %s2040_s22 = smov 1  }
  0x31   : > { %698 = vperm.xlu1 %1566, %v692_v21  }
  0x34   : > { %703 = vperm.xlu0 %1567, %v693_v23  }
  0x35   : > { %708 = vperm.xlu1 %1566, %v694_v22  }
  0x38   : > { %786 = vperm.xlu0 %1567, %v772_v25  }
  0x39   : > { %713 = vperm.xlu1 %1566, %v695_v24  }
  0x3c   : > { %814 = vperm.xlu0 %1567, %v800_v27  }
  0x3d   : > { %791 = vperm.xlu1 %1566, %v773_v26  }
  0x40   : > { %776 = vperm.xlu0 %1567, %v770_v29  }
  0x41   : > { %819 = vperm.xlu1 %1566, %v801_v28  }
  0x44   : > { %804 = vperm.xlu0 %1567, %v798_v31  }
  0x45   : > { %781 = vperm.xlu1 %1566, %v771_v30  }
  0x49   : > { %809 = vperm.xlu1 %1566, %v799_v32  }
  0x9e   : > { %v547_v33 = vpop.permute.xlu0 %546 }
  0x9f   : > { %v629_v34 = vpop.permute.xlu1 %628 }
  0xa0   : > { %v637_v35 = vsel %vm478_vm4, %v629_v34, 0  ;;  %1523 = vmatprep.subr.msk.bf16.mxu0 %vm478_vm4, %v629_v34 }
  0xa1   : > { %1492 = vmatpush3.bf16.msra.mxu0 %v637_v35 }
  0xa2   : > { %v549_v37 = vpop.permute.xlu0 %548 }
  0xa3   : > { %v551_v38 = vsel %vm550_vm5, %v547_v33, %v549_v37 }
  0xa4   : > { %1494 = vmatmul.mubr.msk.bf16.vlgmr.msra.gmra.mxu0 %vm471_vm2, %v1574_v36  ;;  %1522 = vmatprep.subr.msk.bf16.mxu1 %vm478_vm4, %v551_v38  ;;  %v559_v39 = vsel %vm478_vm4, %v551_v38, 0 }
  0xa5   : > { %1486 = vmatpush3.bf16.msra.mxu1 %v559_v39 }
  0xa8   : > { %1488 = vmatmul.mubr.msk.bf16.vlgmr.msra.gmra.mxu1 %vm471_vm2, %v1576_v40 }
  0xac   : > { %v699_v45 = vpop.permute.xlu1 %698 }
  0xaf   : > { %v704_v4 = vpop.permute.xlu0 %703 }
  0xb0   : > { %v709_v51 = vpop.permute.xlu1 %708 }
  0xb4   : > { %v714_v63 = vpop.permute.xlu1 %713 }
  0xef   : > { %v1483_v41 = vpop.f32.mrf.mxu0 }
  0xf1   : > { %v516_v42 = vpop.f32.mrf.mxu0 }
  0xf3   : > { %v1484_v43 = vpop.f32.mrf.mxu0 }
  0xf5   : > { %v519_v44 = vpop.f32.mrf.mxu0 }
 0x164   : > { %v1495_v46 = vpop.f32.mrf.mxu0 }
 0x166   : > { %v673_v48 = vpop.f32.mrf.mxu0 }
 0x168   : > { %v1489_v47 = vpop.f32.mrf.mxu1  ;;  %v1496_v55 = vpop.f32.mrf.mxu0 }
 0x169   : > { %v604_v49 = vadd.f32 %v1489_v47, %v1483_v41  ;;  %v792_v47 = vpop.permute.xlu1 %791 }
 0x16a   : > { %v595_v50 = vpop.f32.mrf.mxu1  ;;  %v676_v0 = vpop.f32.mrf.mxu0 }
 0x16b   : > { %v596_v52 = vadd.f32 %v595_v50, %v516_v42  ;;  %v690_v53 = vadd.f32 %v1495_v46, %v604_v49 }
 0x16c   : > { %v1490_v54 = vpop.f32.mrf.mxu1 }
 0x16d   : > { %v688_v56 = vadd.f32 %v673_v48, %v596_v52  ;;  %v607_v57 = vadd.f32 %v1490_v54, %v1484_v43  ;;  %v718_v62 = vadd.f32 %v709_v51, %v690_v53  ;;  %v787_v48 = vpop.permute.xlu0 %786  ;;  %v820_v49 = vpop.permute.xlu1 %819 }
 0x16e   : > { %v598_v58 = vpop.f32.mrf.mxu1 }
 0x16f   : > { %v716_v59 = vadd.f32 %v699_v45, %v688_v56  ;;  %v691_v60 = vadd.f32 %v1496_v55, %v607_v57  ;;  %v599_v61 = vadd.f32 %v598_v58, %v519_v44  ;;  %v722_v6 = vmax.f32 %v718_v62, 0.0 }
 0x170   : > { %v1875_v62 = vrot.slane %v1791_v5, %v1795_v7 }
 0x171   : > { %v720_v1 = vmax.f32 %v716_v59, 0.0  ;;  %v719_v2 = vadd.f32 %v714_v63, %v691_v60  ;;  %v689_v3 = vadd.f32 %v676_v0, %v599_v61  ;;  %v741_v12 = vmul.f32 %v722_v6, %v722_v6  ;;  %v815_v50 = vpop.permute.xlu0 %814  ;;  %v782_v51 = vpop.permute.xlu1 %781 }
 0x172   : > { %v728_v17 = vsel %vm724_vm6, %v722_v6, 0.0 }
 0x173   : > { %v717_v8 = vadd.f32 %v704_v4, %v689_v3  ;;  %v739_v9 = vmul.f32 %v720_v1, %v720_v1  ;;  %v723_v10 = vmax.f32 %v719_v2, 0.0  ;;  %v725_v13 = vsel %vm724_vm6, %v720_v1, 0.0 }
 0x174   : > { %v746_v23 = vsel %vm724_vm6, %v741_v12, 0.0 }
 0x175   : > { %v721_v11 = vmax.f32 %v717_v8, 0.0  ;;  %v743_v18 = vsel %vm724_vm6, %v739_v9, 0.0  ;;  %v742_v19 = vmul.f32 %v723_v10, %v723_v10  ;;  %v730_v24 = vsel %vm724_vm6, %v723_v10, 0.0  ;;  %v777_v52 = vpop.permute.xlu0 %776  ;;  %v810_v4 = vpop.permute.xlu1 %809 }
 0x177   : > { %v726_v14 = vsel %vm724_vm6, %v721_v11, 0.0  ;;  %v740_v15 = vmul.f32 %v721_v11, %v721_v11  ;;  %v748_v27 = vsel %vm724_vm6, %v742_v19, 0.0 }
 0x178   : > { %v727_v16 = vadd.f32 %v726_v14, %v725_v13 }
 0x179   : > { %v744_v20 = vsel %vm724_vm6, %v740_v15, 0.0  ;;  %v805_v8 = vpop.permute.xlu0 %804  ;;  %v1585_v15 = vld [vmem:[%s2023_s6 + $0x10] sm:$0xff]  }
 0x17a   : > { %v729_v21 = vadd.f32 %v728_v17, %v727_v16  ;;  %v745_v22 = vadd.f32 %v744_v20, %v743_v18  ;;  %1501 = vmatprep.mubr.msk.bf16.mxu1 %vm895_vm7, %v1585_v15 }
 0x17c   : > { %v731_v25 = vadd.f32 %v730_v24, %v729_v21  ;;  %v747_v26 = vadd.f32 %v746_v23, %v745_v22  ;;  %v1580_v22 = vld [vmem:[#allocation3 + $0x10] ss:$8 sps:$4 sm:$0xff]   ;;  %v1582_v24 = vld [vmem:[#allocation3] ss:$8 sps:$4 sm:$0xff]  }
 0x17d   : > { %981 = vrot.lane.b32.xlu0 %v1580_v22, %s2040_s22 }
 0x17e   : > { %v732_v28 = vrot.slane %v731_v25, 4  ;;  %v749_v29 = vadd.f32 %v748_v27, %v747_v26  ;;  %v1586_v26 = vld [vmem:[%s2023_s6 + $0x18] sm:$0xff]   ;;  %v1587_v27 = vld [vmem:[%s2023_s6 + $0x20] sm:$0xff]  }
 0x180   : > { %v733_v30 = vadd.f32 %v732_v28, %v731_v25  ;;  %v750_v31 = vrot.slane %v749_v29, 4  ;;  %v1588_v25 = vld [vmem:[%s2023_s6] sm:$0xff]  }
 0x181   : > { %1509 = vmatprep.mubr.msk.bf16.mxu0 %vm895_vm7, %v1588_v25 }
 0x182   : > { %v734_v32 = vrot.slane %v733_v30, 2  ;;  %v751_v33 = vadd.f32 %v750_v31, %v749_v29  ;;  %v1125_v29 = vld [vmem:[%s2024_s7 + $0x8] sm:$0xff]  ;;  %v1127_v31 = vld [vmem:[%s2024_s7 + $0x18] sm:$0xff] }
 0x184   : > { %v735_v34 = vadd.f32 %v734_v32, %v733_v30  ;;  %v752_v35 = vrot.slane %v751_v33, 2  ;;  %v1124_v30 = vld [vmem:[%s2024_s7] sm:$0xff]  ;;  %v1126_v32 = vld [vmem:[%s2024_s7 + $0x10] sm:$0xff] }
 0x186   : > { %v736_v36 = vrot.slane %v735_v34, 1  ;;  %v753_v37 = vadd.f32 %v752_v35, %v751_v33  ;;  %v1202_v33 = vld [vmem:[%s2025_s8 + $0x8] sm:$0xff]  ;;  %v1229_v35 = vld [vmem:[%s2026_s9] sm:$0xff] }
 0x188   : > { %v737_v38 = vadd.f32 %v736_v36, %v735_v34  ;;  %v754_v39 = vrot.slane %v753_v37, 1  ;;  %v1201_v34 = vld [vmem:[%s2025_s8] sm:$0xff]  ;;  %v1203_v36 = vld [vmem:[%s2025_s8 + $0x10] sm:$0xff] }
 0x18a   : > { %v738_v40 = vmul.f32 0.03125, %v737_v38  ;;  %v755_v41 = vadd.f32 %v754_v39, %v753_v37  ;;  %v1204_v37 = vld [vmem:[%s2025_s8 + $0x18] sm:$0xff]  ;;  %v1230_v38 = vld [vmem:[%s2026_s9 + $0x8] sm:$0xff] }
 0x18b   : > { %v1232_v39 = vld [vmem:[%s2026_s9 + $0x18] sm:$0xff] }
 0x18c   : > { %v756_v42 = vmul.f32 0.03125, %v755_v41  ;;  %v757_v43 = vmul.f32 %v738_v40, %v738_v40  ;;  %v761_v53 = vsub.f32 %v721_v11, %v738_v40  ;;  %v762_v54 = vsub.f32 %v722_v6, %v738_v40  ;;  %v1262_v41 = vld [vmem:[%s2027_s10 + $0x8] sm:$0xff] }
 0x18d   : > { %v763_v55 = vsub.f32 %v723_v10, %v738_v40  ;;  %v760_v56 = vsub.f32 %v720_v1, %v738_v40  ;;  %v1231_v40 = vld [vmem:[%s2026_s9 + $0x10] sm:$0xff] }
 0x18e   : > { %v758_v44 = vsub.f32 %v756_v42, %v757_v43  ;;  %v1261_v42 = vld [vmem:[%s2027_s10] sm:$0xff]  ;;  %v1264_v43 = vld [vmem:[%s2027_s10 + $0x18] sm:$0xff] }
 0x190   : > { %v759_v45 = vmax.f32 %v758_v44, 0.0  ;;  %v1263_v44 = vld [vmem:[%s2027_s10 + $0x10] sm:$0xff] }
 0x192   : > { %v764_v46 = vadd.f32 0.0001, %v759_v45  ;;  %v1302_v45 = vld [vmem:[#allocation4] sm:$0x1] }
 0x194   : > { %1591 = vrsqrt.f32 %v764_v46 }
 0x1a1   : > { %v1592_v57 = vpop.eup %1591 }
 0x1a2   : > { %v767_v58 = vmul.f32 %v1592_v57, %v761_v53  ;;  %v768_v59 = vmul.f32 %v1592_v57, %v762_v54  ;;  %v769_v60 = vmul.f32 %v1592_v57, %v763_v55  ;;  %v766_v61 = vmul.f32 %v1592_v57, %v760_v56  ;;  %v1589_v54 = vld [vmem:[%s2023_s6 + $0x28] sm:$0xff]  }
 0x1a3   : > { %v1590_v55 = vld [vmem:[%s2023_s6 + $0x8] sm:$0xff]  }
 0x1a4   : > { %v795_v63 = vmul.f32 %v782_v51, %v767_v58  ;;  %v796_v0 = vmul.f32 %v787_v48, %v768_v59  ;;  %v797_v2 = vmul.f32 %v792_v47, %v769_v60  ;;  %v794_v3 = vmul.f32 %v777_v52, %v766_v61 }
 0x1a6   : > { %v823_v9 = vadd.f32 %v810_v4, %v795_v63  ;;  %v824_v11 = vadd.f32 %v815_v50, %v796_v0  ;;  %v825_v6 = vadd.f32 %v820_v49, %v797_v2  ;;  %v822_v10 = vadd.f32 %v805_v8, %v794_v3 }
 0x1a8   : > { %v833_v1 = vmul.f32 %v1875_v62, %v823_v9  ;;  %v834_v12 = vmul.f32 %v1875_v62, %v824_v11  ;;  %v835_v13 = vmul.f32 %v1875_v62, %v825_v6  ;;  %v832_v14 = vmul.f32 %v1875_v62, %v822_v10 }
 0x1aa   : > { %v1455_v16 = vpack.c.bf16 %v833_v1, %v833_v1  ;;  %v1454_v17 = vpack.c.bf16 %v832_v14, %v832_v14  ;;  %v1456_v18 = vpack.c.bf16 %v834_v12, %v834_v12  ;;  %v1457_v19 = vpack.c.bf16 %v835_v13, %v835_v13 }
 0x1ac   : > { %853 = vst.msk [vmem:[#allocation3 + $0xc] sm:$0xf] %vm448_vm3, %v1455_v16  ;;  %852 = vst.msk [vmem:[#allocation3 + $0x4] sm:$0xf] %vm448_vm3, %v1454_v17 }
 0x1ad   : > { %854 = vst.msk [vmem:[#allocation3 + $0x14] sm:$0xf] %vm448_vm3, %v1456_v18  ;;  %855 = vst.msk [vmem:[#allocation3 + $0x1c] sm:$0xf] %vm448_vm3, %v1457_v19 }
 0x1b3   : > { %v1581_v23 = vld [vmem:[#allocation3 + $0x4] ss:$8 sps:$4 sm:$0xff]  }
 0x1b4   : > { %v1577_v20 = vld [vmem:[#allocation3 + $0x14] ss:$8 sps:$4 sm:$0xff]   ;;  %v1584_v28 = vld [vmem:[#allocation3 + $0x4] ss:$8 sps:$4 sm:$0xff]  }
 0x1b5   : > { %v1578_v21 = vld [vmem:[#allocation3 + $0x14] ss:$8 sps:$4 sm:$0xff]   ;;  %1497 = vmatprep.subr.bf16.mxu1 %v1577_v20  ;;  %1061 = vrot.lane.b32.xlu0 %v1577_v20, %s2041_s21 }
 0x1b6   : > { %983 = vrot.lane.b32.xlu1 %v1578_v21, %s2040_s22  ;;  %1498 = vmatpush3.bf16.msra.mxu1 %v1577_v20 }
 0x1b7   : > { %1499 = vmatprep.subr.bf16.mxu1 %v1581_v23 }
 0x1b9   : > { %979 = vrot.lane.b32.xlu0 %v1584_v28, %s2040_s22 }
 0x1ba   : > { %977 = vrot.lane.b32.xlu1 %v1582_v24, %s2040_s22  ;;  %1500 = vmatpush3.bf16.msra.mxu1 %v1581_v23  ;;  %s416_s22 = scalar_lea.vmem [#allocation5], %s415_s19 }
 0x1bd   : > { %1502 = vmatmul.mubr.msk.bf16.vlgmr.msra.gmra.mxu1 %vm895_vm7, %v1586_v26  ;;  %1130 = vperm.xlu0 %1567, %v1124_v30  }
 0x1be   : > { %1059 = vrot.lane.b32.xlu1 %v1581_v23, %s2041_s21  ;;  %1517 = vmatprep.mubr.msk.bf16.mxu1 %vm895_vm7, %v1587_v27  ;;  %s1329_s21 = sshll.u32 %s416_s22, 4  ;;  %s1330_s21 = int_to_ptr.vmem [resolvable:$true] %s1329_s21 }
 0x1bf   : > { %s1595_s17 = scalar_lea.vmem %s1330_s21, 16  ;;  %p1602_p0 = scmp.lt.s32.totalorder %s1330_s21, %s1600_s11 }
 0x1c0   : > { %p1596_p11 = scmp.ne.s32.totalorder %s1330_s21, %s1595_s17  ;;  %p1603_p1 = scmp.lt.s32.totalorder %s1601_s0, %s1595_s17 }
 0x1c1   : > { %1140 = vperm.xlu0 %1567, %v1126_v32  }
 0x1c2   : > { %1135 = vperm.xlu1 %1566, %v1125_v29   ;;  %p1597_p12 = pnand %p1596_p11, %p1767_p5  ;;  %p1604_p2 = por %p1603_p1, %p1602_p0 }
 0x1c4   : > { %p1598_p13 = pneg %p1597_p12 }
 0x1c5   : > { %1207 = vperm.xlu0 %1567, %v1201_v34  }
 0x1c6   : > { %1145 = vperm.xlu1 %1566, %v1127_v31   ;;  %p1605_p3 = pnand %p1604_p2, %p1598_p13 }
 0x1c9   : > { %1217 = vperm.xlu0 %1567, %v1203_v36  }
 0x1ca   : > { %1212 = vperm.xlu1 %1566, %v1202_v33  }
 0x1cd   : > { %1240 = vperm.xlu0 %1567, %v1230_v38  }
 0x1ce   : > { %1235 = vperm.xlu1 %1566, %v1229_v35  }
 0x1d1   : > { %1245 = vperm.xlu0 %1567, %v1231_v40  }
 0x1d2   : > { %1222 = vperm.xlu1 %1566, %v1204_v37  }
 0x1d5   : > { %1267 = vperm.xlu0 %1567, %v1261_v42  }
 0x1d6   : > { %1250 = vperm.xlu1 %1566, %v1232_v39  }
 0x1d9   : > { %1277 = vperm.xlu0 %1567, %v1263_v44  }
 0x1da   : > { %1272 = vperm.xlu1 %1566, %v1262_v41  }
 0x1dd   : > { %1305 = vperm.xlu0 %1567, %v1302_v45  }
 0x1de   : > { %1282 = vperm.xlu1 %1566, %v1264_v43  }
 0x1ef   : > { %v982_v47 = vpop.permute.xlu0 %981 }
 0x227   : > { %v1062_v50 = vpop.permute.xlu0 %1061 }
 0x228   : > { %v984_v46 = vpop.permute.xlu1 %983  ;;  %1513 = vmatprep.subr.bf16.mxu1 %v1062_v50 }
 0x229   : > { %v986_v48 = vsel %vm550_vm5, %v982_v47, %v984_v46  ;;  %1514 = vmatpush3.bf16.msra.mxu1 %v1062_v50 }
 0x22a   : > { %1505 = vmatprep.subr.bf16.mxu0 %v986_v48 }
 0x22b   : > { %1506 = vmatpush3.bf16.msra.mxu0 %v986_v48  ;;  %v980_v52 = vpop.permute.xlu0 %979 }
 0x22c   : > { %v978_v49 = vpop.permute.xlu1 %977 }
 0x22d   : > { %v985_v53 = vsel %vm550_vm5, %v978_v49, %v980_v52 }
 0x22e   : > { %1507 = vmatprep.subr.bf16.mxu0 %v985_v53 }
 0x22f   : > { %1508 = vmatpush3.bf16.msra.mxu0 %v985_v53 }
 0x230   : > { %v1060_v51 = vpop.permute.xlu1 %1059 }
 0x231   : > { %1515 = vmatprep.subr.bf16.mxu1 %v1060_v51 }
 0x232   : > { %1516 = vmatpush3.bf16.msra.mxu1 %v1060_v51  ;;  %1510 = vmatmul.mubr.msk.bf16.vlgmr.msra.gmra.mxu0 %vm895_vm7, %v1590_v55 }
 0x235   : > { %1518 = vmatmul.mubr.msk.bf16.vlgmr.msra.gmra.mxu1 %vm895_vm7, %v1589_v54 }
 0x238   : > { %v1131_v63 = vpop.permute.xlu0 %1130 }
 0x23c   : > { %v1141_v13 = vpop.permute.xlu0 %1140 }
 0x23d   : > { %v1136_v4 = vpop.permute.xlu1 %1135 }
 0x241   : > { %v1146_v18 = vpop.permute.xlu1 %1145 }
 0x27d   : > { %v1503_v56 = vpop.f32.mrf.mxu1 }
 0x27f   : > { %v936_v57 = vpop.f32.mrf.mxu1 }
 0x281   : > { %v1504_v58 = vpop.f32.mrf.mxu1 }
 0x283   : > { %v939_v59 = vpop.f32.mrf.mxu1 }
 0x2f2   : > { %v1511_v61 = vpop.f32.mrf.mxu0 }
 0x2f3   : > { %v1038_v0 = vadd.f32 %v1511_v61, %v1503_v56  ;;  %v1213_v61 = vpop.permute.xlu1 %1212 }
 0x2f4   : > { %v1029_v3 = vpop.f32.mrf.mxu0 }
 0x2f5   : > { %v1519_v60 = vpop.f32.mrf.mxu1  ;;  %v1030_v8 = vadd.f32 %v1029_v3, %v936_v57 }
 0x2f6   : > { %v1122_v9 = vadd.f32 %v1519_v60, %v1038_v0  ;;  %v1512_v11 = vpop.f32.mrf.mxu0 }
 0x2f7   : > { %v1105_v2 = vpop.f32.mrf.mxu1  ;;  %v1041_v1 = vadd.f32 %v1512_v11, %v1504_v58  ;;  %v1208_v58 = vpop.permute.xlu0 %1207 }
 0x2f8   : > { %v1120_v6 = vadd.f32 %v1105_v2, %v1030_v8  ;;  %v1032_v12 = vpop.f32.mrf.mxu0  ;;  %v1150_v17 = vadd.f32 %v1141_v13, %v1122_v9 }
 0x2f9   : > { %v1520_v10 = vpop.f32.mrf.mxu1  ;;  %v1033_v16 = vadd.f32 %v1032_v12, %v939_v59 }
 0x2fa   : > { %v1148_v14 = vadd.f32 %v1131_v63, %v1120_v6  ;;  %v1123_v15 = vadd.f32 %v1520_v10, %v1041_v1  ;;  %v1154_v23 = vmax.f32 %v1150_v17, 0.0 }
 0x2fb   : > { %v1108_v19 = vpop.f32.mrf.mxu1  ;;  %v1218_v2 = vpop.permute.xlu0 %1217 }
 0x2fc   : > { %v1152_v20 = vmax.f32 %v1148_v14, 0.0  ;;  %v1151_v21 = vadd.f32 %v1146_v18, %v1123_v15  ;;  %v1121_v22 = vadd.f32 %v1108_v19, %v1033_v16  ;;  %v1172_v28 = vmul.f32 %v1154_v23, %v1154_v23 }
 0x2fd   : > { %v1159_v33 = vsel %vm724_vm6, %v1154_v23, 0.0 }
 0x2fe   : > { %v1149_v24 = vadd.f32 %v1136_v4, %v1121_v22  ;;  %v1170_v25 = vmul.f32 %v1152_v20, %v1152_v20  ;;  %v1155_v26 = vmax.f32 %v1151_v21, 0.0  ;;  %v1156_v29 = vsel %vm724_vm6, %v1152_v20, 0.0  ;;  %v1236_v4 = vpop.permute.xlu1 %1235 }
 0x2ff   : > { %v1177_v39 = vsel %vm724_vm6, %v1172_v28, 0.0  ;;  %v1241_v8 = vpop.permute.xlu0 %1240 }
 0x300   : > { %v1153_v27 = vmax.f32 %v1149_v24, 0.0  ;;  %v1174_v34 = vsel %vm724_vm6, %v1170_v25, 0.0  ;;  %v1173_v35 = vmul.f32 %v1155_v26, %v1155_v26  ;;  %v1161_v40 = vsel %vm724_vm6, %v1155_v26, 0.0 }
 0x302   : > { %v1157_v30 = vsel %vm724_vm6, %v1153_v27, 0.0  ;;  %v1171_v31 = vmul.f32 %v1153_v27, %v1153_v27  ;;  %v1179_v43 = vsel %vm724_vm6, %v1173_v35, 0.0  ;;  %v1223_v9 = vpop.permute.xlu1 %1222 }
 0x303   : > { %v1158_v32 = vadd.f32 %v1157_v30, %v1156_v29  ;;  %v1246_v11 = vpop.permute.xlu0 %1245 }
 0x304   : > { %v1175_v36 = vsel %vm724_vm6, %v1171_v31, 0.0 }
 0x305   : > { %v1160_v37 = vadd.f32 %v1159_v33, %v1158_v32  ;;  %v1176_v38 = vadd.f32 %v1175_v36, %v1174_v34 }
 0x306   : > { %v1251_v6 = vpop.permute.xlu1 %1250 }
 0x307   : > { %v1162_v41 = vadd.f32 %v1161_v40, %v1160_v37  ;;  %v1178_v42 = vadd.f32 %v1177_v39, %v1176_v38  ;;  %v1268_v19 = vpop.permute.xlu0 %1267 }
 0x309   : > { %v1163_v44 = vrot.slane %v1162_v41, 4  ;;  %v1180_v45 = vadd.f32 %v1179_v43, %v1178_v42 }
 0x30a   : > { %v1273_v28 = vpop.permute.xlu1 %1272 }
 0x30b   : > { %v1164_v46 = vadd.f32 %v1163_v44, %v1162_v41  ;;  %v1181_v47 = vrot.slane %v1180_v45, 4  ;;  %v1278_v33 = vpop.permute.xlu0 %1277 }
 0x30d   : > { %v1165_v48 = vrot.slane %v1164_v46, 2  ;;  %v1182_v49 = vadd.f32 %v1181_v47, %v1180_v45 }
 0x30e   : > { %v1283_v37 = vpop.permute.xlu1 %1282 }
 0x30f   : > { %v1166_v50 = vadd.f32 %v1165_v48, %v1164_v46  ;;  %v1183_v51 = vrot.slane %v1182_v49, 2 }
 0x311   : > { %v1167_v52 = vrot.slane %v1166_v50, 1  ;;  %v1184_v53 = vadd.f32 %v1183_v51, %v1182_v49  ;;  %v1306_v49 = vpop.permute.xlu0 %1305 }
 0x312   : > { %v1311_v51 = vrot.slane %v1306_v49, %v1795_v7 }
 0x313   : > { %v1168_v54 = vadd.f32 %v1167_v52, %v1166_v50  ;;  %v1185_v55 = vrot.slane %v1184_v53, 1 }
 0x315   : > { %v1169_v56 = vmul.f32 0.03125, %v1168_v54  ;;  %v1186_v57 = vadd.f32 %v1185_v55, %v1184_v53 }
 0x317   : > { %v1187_v59 = vmul.f32 0.03125, %v1186_v57  ;;  %v1188_v60 = vmul.f32 %v1169_v56, %v1169_v56  ;;  %v1191_v10 = vsub.f32 %v1152_v20, %v1169_v56  ;;  %v1192_v1 = vsub.f32 %v1153_v27, %v1169_v56 }
 0x318   : > { %v1193_v12 = vsub.f32 %v1154_v23, %v1169_v56  ;;  %v1194_v13 = vsub.f32 %v1155_v26, %v1169_v56 }
 0x319   : > { %v1189_v63 = vsub.f32 %v1187_v59, %v1188_v60 }
 0x31b   : > { %v1190_v0 = vmax.f32 %v1189_v63, 0.0 }
 0x31d   : > { %v1195_v3 = vadd.f32 0.0001, %v1190_v0 }
 0x31f   : > { %1593 = vrsqrt.f32 %v1195_v3 }
 0x32c   : > { %v1594_v14 = vpop.eup %1593 }
 0x32d   : > { %v1198_v15 = vmul.f32 %v1594_v14, %v1192_v1  ;;  %v1197_v16 = vmul.f32 %v1594_v14, %v1191_v10  ;;  %v1199_v17 = vmul.f32 %v1594_v14, %v1193_v12  ;;  %v1200_v18 = vmul.f32 %v1594_v14, %v1194_v13 }
 0x32f   : > { %v1226_v21 = vmul.f32 %v1213_v61, %v1198_v15  ;;  %v1225_v22 = vmul.f32 %v1208_v58, %v1197_v16  ;;  %v1227_v24 = vmul.f32 %v1218_v2, %v1199_v17  ;;  %v1228_v25 = vmul.f32 %v1223_v9, %v1200_v18 }
 0x331   : > { %v1254_v29 = vadd.f32 %v1241_v8, %v1226_v21  ;;  %v1253_v30 = vadd.f32 %v1236_v4, %v1225_v22  ;;  %v1255_v31 = vadd.f32 %v1246_v11, %v1227_v24  ;;  %v1256_v32 = vadd.f32 %v1251_v6, %v1228_v25 }
 0x333   : > { %v1258_v20 = vmul.f32 %v1254_v29, %v1875_v62  ;;  %v1257_v23 = vmul.f32 %v1253_v30, %v1875_v62  ;;  %v1259_v26 = vmul.f32 %v1255_v31, %v1875_v62  ;;  %v1260_v27 = vmul.f32 %v1256_v32, %v1875_v62 }
 0x335   : > { %v1286_v34 = vmul.f32 %v1273_v28, %v1258_v20  ;;  %v1285_v35 = vmul.f32 %v1268_v19, %v1257_v23  ;;  %v1287_v36 = vmul.f32 %v1278_v33, %v1259_v26  ;;  %v1288_v39 = vmul.f32 %v1283_v37, %v1260_v27 }
 0x337   : > { %v1290_v38 = vsel %vm724_vm6, %v1286_v34, 0.0  ;;  %v1289_v40 = vsel %vm724_vm6, %v1285_v35, 0.0  ;;  %v1292_v42 = vsel %vm724_vm6, %v1287_v36, 0.0  ;;  %v1294_v44 = vsel %vm724_vm6, %v1288_v39, 0.0 }
 0x338   : > { %v1291_v41 = vadd.f32 %v1290_v38, %v1289_v40 }
 0x33a   : > { %v1293_v43 = vadd.f32 %v1292_v42, %v1291_v41 }
 0x33c   : > { %v1295_v45 = vadd.f32 %v1294_v44, %v1293_v43 }
 0x33e   : > { %v1296_v62 = vrot.slane %v1295_v45, 4 }
 0x340   : > { %v1297_v46 = vadd.f32 %v1296_v62, %v1295_v45 }
 0x342   : > { %v1298_v47 = vrot.slane %v1297_v46, 2 }
 0x344   : > { %v1299_v48 = vadd.f32 %v1298_v47, %v1297_v46 }
 0x346   : > { %v1300_v50 = vrot.slane %v1299_v48, 1 }
 0x348   : > { %v1301_v52 = vadd.f32 %v1300_v50, %v1299_v48 }
 0x34a   : > { %v1312_v53 = vadd.f32 %v1311_v51, %v1301_v52 }
 0x34c   : > { %v1313_v54 = vmul.f32 %v1312_v53, %v1791_v5 }
 0x34e   : > { %1315 = vst.msk [vmem:[%s416_s22] sm:$0x1] %vm1314_vm8, %v1313_v54 }
 0x34f   : > { %1608 = shalt.err (!%p1605_p3)
}
 0x350   : > { %s1609_s1 = scalar_lea.hbm %s1327_s27, 16  ;;  %s1613_s22 = scalar_lea.hbm %s2029_s12, 32 }
 0x351   : > { %p1610_p4 = scmp.ne.s32.totalorder %s1327_s27, %s1609_s1  ;;  %p1614_p9 = scmp.lt.s32.totalorder %s1327_s27, %s2029_s12 }
 0x352   : > { %p1615_p10 = scmp.lt.s32.totalorder %s1613_s22, %s1609_s1 }
 0x353   : > { %p1611_p7 = pnand %p1610_p4, %p1767_p5 }
 0x354   : > { %p1616_p11 = por %p1615_p10, %p1614_p9 }
 0x355   : > { %p1612_p8 = pneg %p1611_p7 }
 0x357   : > { %p1617_p12 = pnand %p1616_p11, %p1612_p8 }
 0x359   : > { %1620 = shalt.err (!%p1617_p12)
}
 0x35a   : > { %1524 = dma.vmem_to_hbm [thread:$0]  (%p1767_p5), %s1330_s21, 16, %s1327_s27, %s1317_s16  }
 0x35b PF: > { %p1530_p13 = scmp.ge.s32.totalorder %s1655_s26, 2  ;;  %s1341_s0 = sand.u32 1, %s1643_s23  }
 0x35c   : > { %s1342_s17 = scalar_lea.sflag [#allocation6], %s1341_s0 }
 0x35d   : > { %p1527_p0 = pnand %p1530_p13, %p1771_p6 }
 0x35f   : > { %p1528_p1 = pneg %p1527_p0 }
 0x361   : > { %1638 = dma.done.wait (%p1528_p1), %s1342_s17, 16  }
 0x362   : > { %1640 = vsyncadd (%p1528_p1), %s1342_s17, 4294967280  ;;  %p24_p2 = scmp.ge.s32.totalorder %s1754_s28, 4   ;;  %s2042_s23 = smov %s1647_s24 }
 0x363   : > { %s2043_s24 = smov %s1651_s25  ;;  %s2044_s25 = smov %s1765_s13 }
 0x364   : > { %s2045_s26 = smov %s1754_s28  ;;  %26 = sbr.rel (!%p24_p2) target bundleno = 6 (0x6), region = 110 }
 0x369   :  { %1346 = vsyncpa [#allocation6], 1 }
 0x36a   :  { %1348 = vsyncpa [#allocation6 + $0x1], 1 }

</bundles_post_ra>
